<compile_context>
chip_gen: v6e
topology: v6e:2x2x1
jax: 0.10.0
libtpu: 0.0.40
codegen_flags: <defaults>
</compile_context>

<pallas_src>
import functools

import jax
import jax.numpy as jnp
from jax.experimental import pallas as pl
from jax.experimental.pallas import tpu as pltpu


def _detect_head_kernel(x_ref, w_ref, b_ref, o_ref):
    """One (batch image, spatial tile) grid step.

    x_ref: (Cin, tile)   activations in native NCHW order (no host transpose)
    w_ref: (Cout, Cin)   1x1-conv weights
    b_ref: (Cout, 1)     bias column
    o_ref: (tile, Cout)  NHWC-ordered output rows
    """
    # MXU-native orientation: contract the LHS *last* dim against the RHS *first* dim,
    # so neither operand needs a relayout; in particular the big (Cin, tile) activation
    # tile streams into the MXU as-is.  Result is channel-major (Cout, tile).
    acc = jax.lax.dot_general(
        w_ref[...],
        x_ref[...],
        dimension_numbers=(((1,), (0,)), ((), ())),
        preferred_element_type=jnp.float32,
    )
    # Bias while still channel-major: (Cout, tile) is lane-dense (Cout=24 = 3 full
    # sublane tiles), ~5x fewer vregs touched than adding after the transpose.
    acc = acc + b_ref[...]
    # Only the small (Cout, tile) result is transposed through the XLU (not the
    # 128-channel activation tile), then stored as NHWC rows.
    o_ref[...] = acc.T.astype(o_ref.dtype)


@functools.partial(jax.jit, static_argnames=("tile_hw",))
def yolo_detect_head(x_nchw, weight, bias, *, tile_hw=4096):
    """Fused 1x1 conv + NCHW->NHWC permute.

    x_nchw: (N, 128, H, W); weight: (Cout, 128, 1, 1); bias: (Cout,).
    Returns (N, H, W, Cout) == detector(x).permute(0, 2, 3, 1).contiguous().
    """
    n, cin, h, w = x_nchw.shape
    cout = weight.shape[0]
    hw = h * w

    x_rows = x_nchw.reshape(n, cin, hw)   # free reshape, stays in native NCHW layout
    w_mat = weight.reshape(cout, cin)     # (Cout, Cin): MXU-native LHS, no transpose
    b_col = bias.reshape(cout, 1)         # column so the bias adds pre-transpose

    # ---- spatial tile selection (all static Python) --------------------------------
    # Tile is always a multiple of 128 and <= H*W (so every lane dim, including the
    # in-kernel transpose, stays 128-aligned); ragged tails use Pallas masking.
    # For batch==1 make at least 2 spatial grid steps so megacore (v7x) can split work.
    if hw >= 128:
        chunks_total = pl.cdiv(hw, 128)
        max_chunks = max(tile_hw // 128, 1)
        want_chunks = pl.cdiv(chunks_total, 2) if (n == 1 and chunks_total > 1) else chunks_total
        chunks = max(1, min(max_chunks, want_chunks, hw // 128))
        tile = 128 * chunks
    else:
        tile = hw  # tiny maps (< 128 positions): one full-extent block
    grid = (n, pl.cdiv(hw, tile))

    out = pl.pallas_call(
        _detect_head_kernel,
        out_shape=jax.ShapeDtypeStruct((n, hw, cout), x_nchw.dtype),
        grid_spec=pltpu.PrefetchScalarGridSpec(
            num_scalar_prefetch=0,
            grid=grid,
            in_specs=[
                # one image, all Cin channels, a 128-aligned tile of spatial positions
                pl.BlockSpec((None, cin, tile), lambda b, j: (b, 0, j)),
                pl.BlockSpec((cout, cin), lambda b, j: (0, 0)),   # full weight matrix
                pl.BlockSpec((cout, 1), lambda b, j: (0, 0)),     # bias column
            ],
            out_specs=pl.BlockSpec((None, tile, cout), lambda b, j: (b, j, 0)),
        ),
        compiler_params=pltpu.CompilerParams(
            # Every grid step writes a disjoint output block -> both axes shardable
            # across v7x's two TensorCores.
            dimension_semantics=("parallel", "parallel"),
            # Headroom for the f32 tiles + double buffering (v5e scoped default is 16 MiB).
            vmem_limit_bytes=32 * 1024 * 1024,
        ),
    )(x_rows, w_mat, b_col)

    return out.reshape(n, h, w, cout)


def init_detect_head_params(key, num_classes, num_anchors, in_channels=128):
    """Deterministic synthetic init matching nn.Conv2d(128, A*(5+C), kernel_size=1)."""
    cout = num_anchors * (5 + num_classes)
    kw, kb = jax.random.split(key)
    # PyTorch default init: U(-bound, bound), bound = 1/sqrt(fan_in) for a 1x1 conv.
    bound = 1.0 / jnp.sqrt(float(in_channels))
    weight = jax.random.uniform(kw, (cout, in_channels, 1, 1),
                                minval=-bound, maxval=bound, dtype=jnp.float32)
    bias = jax.random.uniform(kb, (cout,), minval=-bound, maxval=bound,
                              dtype=jnp.float32)
    return weight, bias


def _reference(x_nchw, weight, bias):
    cout, cin = weight.shape[0], weight.shape[1]
    return jnp.einsum("nchw,oc->nhwo", x_nchw, weight.reshape(cout, cin),
                      precision="highest") + bias


if __name__ == "__main__":
    in_channels = 128
    num_classes = 3
    num_anchors = 3  # Cout = 3 * (5 + 3) = 24
    cout = num_anchors * (5 + num_classes)

    key = jax.random.PRNGKey(0)
    k1, k2, k3, kp = jax.random.split(key, 4)
    weight, bias = init_detect_head_params(kp, num_classes, num_anchors,
                                           in_channels=in_channels)

    # (a) 16x16 map, batch 2: H*W = 256, exact 128-aligned tiling, 2 parallel batch steps.
    x_a = jax.random.normal(k1, (2, in_channels, 16, 16), dtype=jnp.float32)
    out_a = jax.block_until_ready(yolo_detect_head(x_a, weight, bias))
    assert out_a.shape == (2, 16, 16, cout)
    assert jnp.allclose(out_a, _reference(x_a, weight, bias), atol=2e-3, rtol=2e-3)

    # (b) 20x20 map (real YOLO size, H*W = 400), batch 1: spatial axis split into two
    #     grid steps (tile = 256) with a masked ragged tail -> megacore-friendly.
    x_b = jax.random.normal(k2, (1, in_channels, 20, 20), dtype=jnp.float32)
    out_b = jax.block_until_ready(yolo_detect_head(x_b, weight, bias))
    assert out_b.shape == (1, 20, 20, cout)
    assert jnp.allclose(out_b, _reference(x_b, weight, bias), atol=2e-3, rtol=2e-3)

    # (c) 13x13 map (H*W = 169), batch 1: tile clamps to 128, ragged 41-row tail.
    x_c = jax.random.normal(k3, (1, in_channels, 13, 13), dtype=jnp.float32)
    out_c = jax.block_until_ready(yolo_detect_head(x_c, weight, bias))
    assert out_c.shape == (1, 13, 13, cout)
    assert jnp.allclose(out_c, _reference(x_c, weight, bias), atol=2e-3, rtol=2e-3)

    # NOTE: the original PyTorch forward() has no explicit return (returns None);
    # this kernel returns the permuted conv output, which is the value it computes.
    # TODO(synk): nothing else in the module maps to device code.
    print("KERNEL_OK")
</pallas_src>

<mosaic_0001>
module attributes {stable_mosaic.version = 11 : i64} {
  func.func @_detect_head_kernel(%arg0: i32, %arg1: i32, %arg2: memref<1x128x256xf32, #tpu.memory_space<vmem>>, %arg3: memref<24x128xf32, #tpu.memory_space<vmem>>, %arg4: memref<24x1xf32, #tpu.memory_space<vmem>>, %arg5: memref<1x256x24xf32, #tpu.memory_space<vmem>>) attributes {dimension_semantics = [#tpu.dimension_semantics<parallel>, #tpu.dimension_semantics<parallel>], iteration_bounds = array<i64: 2, 1>, scalar_prefetch = 0 : i64, scratch_operands = 0 : i64, tpu.core_type = #tpu.core_type<tc>, window_params = [{transform_indices = @transform_0, window_bounds = array<i64: 1, 128, 256>}, {pipeline_mode = #tpu.pipeline_mode<synchronous>, transform_indices = @transform_1, window_bounds = array<i64: 24, 128>}, {pipeline_mode = #tpu.pipeline_mode<synchronous>, transform_indices = @transform_2, window_bounds = array<i64: 24, 1>}, {transform_indices = @transform_3, window_bounds = array<i64: 1, 256, 24>}]} {
    %c0 = arith.constant 0 : index
    %c0_0 = arith.constant 0 : index
    %0 = vector.load %arg3[%c0, %c0_0] : memref<24x128xf32, #tpu.memory_space<vmem>>, vector<24x128xf32>
    %c0_1 = arith.constant 0 : index
    %c0_2 = arith.constant 0 : index
    %c0_3 = arith.constant 0 : index
    %1 = vector.load %arg2[%c0_1, %c0_2, %c0_3] : memref<1x128x256xf32, #tpu.memory_space<vmem>>, vector<1x128x256xf32>
    %2 = vector.shape_cast %1 : vector<1x128x256xf32> to vector<128x256xf32>
    %cst = arith.constant dense<0.000000e+00> : vector<24x256xf32>
    %3 = tpu.matmul %0, %2, %cst {dimension_numbers = #tpu.dot_dimension_numbers<[1], [0], [0], [1], [0, 0, 1, 1], [], []>} : vector<24x128xf32>, vector<128x256xf32>, vector<24x256xf32> -> vector<24x256xf32>
    %c0_4 = arith.constant 0 : index
    %c0_5 = arith.constant 0 : index
    %4 = vector.load %arg4[%c0_4, %c0_5] : memref<24x1xf32, #tpu.memory_space<vmem>>, vector<24x1xf32>
    %5 = vector.broadcast %4 : vector<24x1xf32> to vector<24x256xf32>
    %6 = arith.addf %3, %5 : vector<24x256xf32>
    %7 = tpu.transpose %6, [1, 0] : vector<24x256xf32> -> vector<256x24xf32>
    %c0_6 = arith.constant 0 : index
    %c0_7 = arith.constant 0 : index
    %c0_8 = arith.constant 0 : index
    %8 = vector.load %arg5[%c0_6, %c0_7, %c0_8] : memref<1x256x24xf32, #tpu.memory_space<vmem>>, vector<1x256x24xf32>
    %9 = vector.shape_cast %8 : vector<1x256x24xf32> to vector<256x24xf32>
    %10 = vector.shape_cast %7 : vector<256x24xf32> to vector<1x256x24xf32>
    tpu.vector_store %arg5[%c0_6, %c0_7, %c0_8], %10 {strides = array<i32>} : memref<1x256x24xf32, #tpu.memory_space<vmem>>, vector<1x256x24xf32>,
    return
  }
  func.func @transform_0(%arg0: i32, %arg1: i32) -> (i32, i32, i32) {
    %c0_i32 = arith.constant 0 : i32
    %c0_i32_0 = arith.constant 0 : i32
    return %arg0, %c0_i32, %arg1 : i32, i32, i32
  }
  func.func @transform_1(%arg0: i32, %arg1: i32) -> (i32, i32) {
    %c0_i32 = arith.constant 0 : i32
    %c0_i32_0 = arith.constant 0 : i32
    %c0_i32_1 = arith.constant 0 : i32
    return %c0_i32, %c0_i32_0 : i32, i32
  }
  func.func @transform_2(%arg0: i32, %arg1: i32) -> (i32, i32) {
    %c0_i32 = arith.constant 0 : i32
    %c0_i32_0 = arith.constant 0 : i32
    %c0_i32_1 = arith.constant 0 : i32
    return %c0_i32, %c0_i32_0 : i32, i32
  }
  func.func @transform_3(%arg0: i32, %arg1: i32) -> (i32, i32, i32) {
    %c0_i32 = arith.constant 0 : i32
    %c0_i32_0 = arith.constant 0 : i32
    return %arg0, %arg1, %c0_i32 : i32, i32, i32
  }
}

</mosaic_0001>

<bundles_post_ra>
// kernel: yolo_detect_head.1
= control target key start
LH: loop header
LB: loop body
LE: loop exit
PB: predicated region body
PF: predicated region fallthrough
CT: control target
= control target key end

     0   :  { %8 = vsyncpa [#allocation3], 0  ;;  %s979_s0 = inlined_call_operand.vmem [shape: f32[2,128,256], index: 0, kind: input, shape index: {}]   ;;  %s980_s1 = inlined_call_operand.vmem [shape: f32[24,128], index: 1, kind: input, shape index: {}]   ;;  %s981_s2 = inlined_call_operand.vmem [shape: f32[24,1], index: 2, kind: input, shape index: {}]   ;;  %s982_s3 = inlined_call_operand.hbm [shape: f32[2,256,24], index: 3, kind: output, shape index: {}]  }
   0x1   :  { %10 = vsyncpa [#allocation3 + $0x1], 0  ;;  %s739_s12 = smov 0   ;;  %s741_s13 = smov 0  }
   0x2   :  { %s743_s14 = smov 0   ;;  %s745_s15 = smov 0  }
   0x3   :  { %s747_s16 = smov 0   ;;  %s749_s17 = smov 0  }
   0x4 LB: > { %s528_s18 = sadd.s32 4294967295, %s712_s17   ;;  %s529_s19 = sadd.s32 4294967294, %s712_s17   ;;  %s712_s17 = sphi %s749_s17, %s16_s17   ;;  %s708_s16 = sphi %s747_s16, %s989_s16   ;;  %s704_s15 = sphi %s745_s15, %s988_s15   ;;  %s700_s14 = sphi %s743_s14, %s987_s14   ;;  %s696_s13 = sphi %s741_s13, %s986_s13   ;;  %s692_s12 = sphi %s739_s12, %s985_s12  }
   0x5   : > { %s28_s20 = sadd.s32 1, %s708_s16  ;;  %s107_s21 = sadd.s32 1, %s700_s14 }
   0x6   : > { %p30_p0 = scmp.ge.s32.totalorder %s28_s20, 2  ;;  %p117_p1 = scmp.ne.s32.totalorder %s700_s14, %s696_s13 }
   0x7   : > { %p118_p2 = scmp.eq.s32.totalorder %s528_s18, 1  ;;  %p123_p3 = scmp.ne.s32.totalorder %s696_s13, %s692_s12 }
   0x8   : > { %s991_s20 = smov (%p30_p0, %s28_s20), 0  ;;  %p124_p5 = scmp.eq.s32.totalorder %s529_s19, 1 }
   0x9   : > { %p779_p4 = por %p118_p2, %p117_p1  ;;  %s102_s23 = ssub.s32 %s708_s16, %s991_s20 }
   0xa   : > { %p532_p6 = scmp.ge.s32.totalorder %s712_s17, 1  ;;  %p105_p7 = scmp.eq.s32.totalorder %s102_s23, 0 }
   0xb   : > { %p786_p8 = por %p124_p5, %p123_p3  ;;  %p161_p9 = scmp.lt.s32.totalorder %s712_s17, 3 }
   0xc   : > { %s792_s25 = scalar_select %p105_p7, %s700_s14, %s107_s21  }
   0xd   : > { %p162_p10 = pnand %p532_p6, %p161_p9 }
   0xe   : > { %p190_p11 = scmp.lt.s32.totalorder (!%p162_p10), %s704_s15, 1  ;;  %s186_s26 = sand.u32 (!%p162_p10), 1, %s696_s13  }
   0xf   : > { %165 = sbr.rel (%p162_p10) target bundleno = 453 (0x1c5), region = 32  ;;  %s533_s27 = sshll.u32 (!%p162_p10), %s186_s26, 8 }
  0x10   : > { %s857_s28 = scalar_lea.vmem (!%p162_p10), [#allocation2], %s533_s27  ;;  %s542_s29 = sshll.u32 (!%p162_p10), %s704_s15, 12 }
  0x11   : > { %s924_s6 = scalar_lea.hbm (!%p162_p10), %s982_s3, %s542_s29  ;;  %s716_s8 = smov (!%p162_p10), [#allocation2]  }
  0x12   : > { %s640_s9 = sshll.u32 (!%p162_p10), %s716_s8, 4  ;;  %s641_s9 = int_to_ptr.vmem [resolvable:$false] %s640_s9 }
  0x13   : > { %s642_s10 = scalar_lea.vmem (!%p162_p10), %s641_s9, 8192 }
  0x14   : > { %v714_v0 = vmov 0.0   ;;  %v235_v1 = vld [vmem:[%s981_s2] sm:$0xff]  ;;  %v237_v2 = vld [vmem:[%s981_s2 + $0x10] sm:$0xff]  ;;  %s191_s30 = scalar_select %p190_p11, %s704_s15, 1  ;;  %v715_v3 = vmov 0   ;;  %v201_v37 = vld [vmem:[%s980_s1 + $0x8] sm:$0xff] }
  0x15   : > { %317 = vmatprep.mubr.f32.mxu0 %v714_v0  ;;  %323 = vmatprep.mubr.f32.mxu1 %v714_v0  ;;  %v200_v36 = vld [vmem:[%s980_s1] sm:$0xff]  ;;  %v236_v38 = vld [vmem:[%s981_s2 + $0x8] sm:$0xff]  ;;  %v202_v39 = vld [vmem:[%s980_s1 + $0x10] sm:$0xff]  ;;  %vm400_vm0 = vcmask 195584   ;;  %s934_s15 = scalar_lea.sflag [#allocation3], %s186_s26 }
  0x16   : > { %634 = vset.pattern.permute.xlu0 %v715_v3  ;;  %635 = vset.pattern.permute.xlu1 %v715_v3  ;;  %s541_s4 = sshll.u32 %s191_s30, 8  ;;  %s449_s30 = sshll.u32 %s857_s28, 4  ;;  %s926_s30 = int_to_ptr.vmem [resolvable:$true] %s449_s30 }
  0x17   : > { %240 = vperm.xlu0 %634, %v235_v1   ;;  %250 = vperm.xlu1 %635, %v237_v2   ;;  %s807_s7 = scalar_lea.vmem %s979_s0, %s541_s4  ;;  %p643_p1 = scmp.lt.s32.totalorder %s926_s30, %s641_s9 }
  0x18   : > { %v234_v4 = vld [vmem:[%s807_s7 + $0xf8] sm:$0xff]  ;;  %v233_v5 = vld [vmem:[%s807_s7 + $0xf0] sm:$0xff]  ;;  %v232_v6 = vld [vmem:[%s807_s7 + $0xe8] sm:$0xff] }
  0x19   : > { %253 = vmatprep.subr.mxu0 %v234_v4  ;;  %543 = vmatprep.subr.mxu1 %v234_v4  ;;  %v231_v7 = vld [vmem:[%s807_s7 + $0xe0] sm:$0xff]  ;;  %v230_v8 = vld [vmem:[%s807_s7 + $0xd8] sm:$0xff]  ;;  %v229_v9 = vld [vmem:[%s807_s7 + $0xd0] sm:$0xff] }
  0x1a   : > { %254 = vmatpush1.msra.mxu0 %v233_v5  ;;  %559 = vmatpush1.msra.mxu1 %v233_v5  ;;  %v228_v10 = vld [vmem:[%s807_s7 + $0xc8] sm:$0xff]  ;;  %v227_v11 = vld [vmem:[%s807_s7 + $0xc0] sm:$0xff]  ;;  %v226_v12 = vld [vmem:[%s807_s7 + $0xb8] sm:$0xff] }
  0x1b   : > { %255 = vmatprep.subr.mxu0 %v232_v6  ;;  %544 = vmatprep.subr.mxu1 %v232_v6  ;;  %v225_v13 = vld [vmem:[%s807_s7 + $0xb0] sm:$0xff]  ;;  %v224_v14 = vld [vmem:[%s807_s7 + $0xa8] sm:$0xff]  ;;  %v223_v15 = vld [vmem:[%s807_s7 + $0xa0] sm:$0xff] }
  0x1c   : > { %256 = vmatpush1.msra.mxu0 %v231_v7  ;;  %560 = vmatpush1.msra.mxu1 %v231_v7  ;;  %v222_v16 = vld [vmem:[%s807_s7 + $0x98] sm:$0xff]  ;;  %v221_v17 = vld [vmem:[%s807_s7 + $0x90] sm:$0xff]  ;;  %v220_v18 = vld [vmem:[%s807_s7 + $0x88] sm:$0xff] }
  0x1d   : > { %257 = vmatprep.subr.mxu0 %v230_v8  ;;  %545 = vmatprep.subr.mxu1 %v230_v8  ;;  %v219_v19 = vld [vmem:[%s807_s7 + $0x80] sm:$0xff]  ;;  %v218_v20 = vld [vmem:[%s807_s7 + $0x78] sm:$0xff]  ;;  %v217_v21 = vld [vmem:[%s807_s7 + $0x70] sm:$0xff] }
  0x1e   : > { %258 = vmatpush1.msra.mxu0 %v229_v9  ;;  %561 = vmatpush1.msra.mxu1 %v229_v9  ;;  %v216_v22 = vld [vmem:[%s807_s7 + $0x68] sm:$0xff]  ;;  %v215_v23 = vld [vmem:[%s807_s7 + $0x60] sm:$0xff]  ;;  %v214_v24 = vld [vmem:[%s807_s7 + $0x58] sm:$0xff] }
  0x1f   : > { %259 = vmatprep.subr.mxu0 %v228_v10  ;;  %546 = vmatprep.subr.mxu1 %v228_v10  ;;  %v213_v25 = vld [vmem:[%s807_s7 + $0x50] sm:$0xff]  ;;  %v212_v26 = vld [vmem:[%s807_s7 + $0x48] sm:$0xff]  ;;  %v211_v27 = vld [vmem:[%s807_s7 + $0x40] sm:$0xff] }
  0x20   : > { %260 = vmatpush1.msra.mxu0 %v227_v11  ;;  %562 = vmatpush1.msra.mxu1 %v227_v11  ;;  %v210_v28 = vld [vmem:[%s807_s7 + $0x38] sm:$0xff]  ;;  %v209_v29 = vld [vmem:[%s807_s7 + $0x30] sm:$0xff]  ;;  %v208_v30 = vld [vmem:[%s807_s7 + $0x28] sm:$0xff] }
  0x21   : > { %261 = vmatprep.subr.mxu0 %v226_v12  ;;  %547 = vmatprep.subr.mxu1 %v226_v12  ;;  %v207_v31 = vld [vmem:[%s807_s7 + $0x20] sm:$0xff]  ;;  %v206_v32 = vld [vmem:[%s807_s7 + $0x18] sm:$0xff]  ;;  %v205_v33 = vld [vmem:[%s807_s7 + $0x10] sm:$0xff] }
  0x22   : > { %262 = vmatpush1.msra.mxu0 %v225_v13  ;;  %563 = vmatpush1.msra.mxu1 %v225_v13  ;;  %v204_v34 = vld [vmem:[%s807_s7 + $0x8] sm:$0xff]  ;;  %v203_v35 = vld [vmem:[%s807_s7] sm:$0xff]  ;;  %s636_s7 = scalar_lea.vmem %s926_s30, 4096 }
  0x23   : > { %263 = vmatprep.subr.mxu0 %v224_v14  ;;  %548 = vmatprep.subr.mxu1 %v224_v14  ;;  %p637_p12 = scmp.ne.s32.totalorder %s926_s30, %s636_s7  ;;  %p644_p2 = scmp.lt.s32.totalorder %s642_s10, %s636_s7 }
  0x24   : > { %264 = vmatpush1.msra.mxu0 %v223_v15  ;;  %564 = vmatpush1.msra.mxu1 %v223_v15 }
  0x25   : > { %265 = vmatprep.subr.mxu0 %v222_v16  ;;  %549 = vmatprep.subr.mxu1 %v222_v16  ;;  %p638_p13 = pnand %p637_p12, %p779_p4  ;;  %p645_p3 = por %p644_p2, %p643_p1 }
  0x26   : > { %266 = vmatpush1.msra.mxu0 %v221_v17  ;;  %565 = vmatpush1.msra.mxu1 %v221_v17 }
  0x27   : > { %267 = vmatprep.subr.mxu0 %v220_v18  ;;  %550 = vmatprep.subr.mxu1 %v220_v18  ;;  %p639_p0 = pneg %p638_p13 }
  0x28   : > { %268 = vmatpush1.msra.mxu0 %v219_v19  ;;  %566 = vmatpush1.msra.mxu1 %v219_v19 }
  0x29   : > { %269 = vmatprep.subr.mxu0 %v218_v20  ;;  %551 = vmatprep.subr.mxu1 %v218_v20  ;;  %p646_p5 = pnand %p645_p3, %p639_p0 }
  0x2a   : > { %270 = vmatpush1.msra.mxu0 %v217_v21  ;;  %567 = vmatpush1.msra.mxu1 %v217_v21 }
  0x2b   : > { %271 = vmatprep.subr.mxu0 %v216_v22  ;;  %552 = vmatprep.subr.mxu1 %v216_v22 }
  0x2c   : > { %272 = vmatpush1.msra.mxu0 %v215_v23  ;;  %568 = vmatpush1.msra.mxu1 %v215_v23 }
  0x2d   : > { %273 = vmatprep.subr.mxu0 %v214_v24  ;;  %553 = vmatprep.subr.mxu1 %v214_v24 }
  0x2e   : > { %274 = vmatpush1.msra.mxu0 %v213_v25  ;;  %569 = vmatpush1.msra.mxu1 %v213_v25 }
  0x2f   : > { %275 = vmatprep.subr.mxu0 %v212_v26  ;;  %554 = vmatprep.subr.mxu1 %v212_v26 }
  0x30   : > { %276 = vmatpush1.msra.mxu0 %v211_v27  ;;  %570 = vmatpush1.msra.mxu1 %v211_v27 }
  0x31   : > { %277 = vmatprep.subr.mxu0 %v210_v28  ;;  %555 = vmatprep.subr.mxu1 %v210_v28 }
  0x32   : > { %278 = vmatpush1.msra.mxu0 %v209_v29  ;;  %571 = vmatpush1.msra.mxu1 %v209_v29 }
  0x33   : > { %279 = vmatprep.subr.mxu0 %v208_v30  ;;  %556 = vmatprep.subr.mxu1 %v208_v30 }
  0x34   : > { %280 = vmatpush1.msra.mxu0 %v207_v31  ;;  %572 = vmatpush1.msra.mxu1 %v207_v31 }
  0x35   : > { %281 = vmatprep.subr.mxu0 %v206_v32  ;;  %557 = vmatprep.subr.mxu1 %v206_v32 }
  0x36   : > { %282 = vmatpush1.msra.mxu0 %v205_v33  ;;  %573 = vmatpush1.msra.mxu1 %v205_v33 }
  0x37   : > { %283 = vmatprep.subr.mxu0 %v204_v34  ;;  %558 = vmatprep.subr.mxu1 %v204_v34 }
  0x38   : > { %284 = vmatpush1.msra.mxu0 %v203_v35  ;;  %574 = vmatpush1.msra.mxu1 %v203_v35 }
  0x39   : > { %318 = vmatmul.mubr.f32.vlgmr.msra.gmra.mxu0 %v200_v36  ;;  %324 = vmatmul.mubr.f32.vlgmr.msra.gmra.mxu1 %v201_v37 }
  0x3a   : > { %329 = vmatprep.mubr.f32.mxu1 %v714_v0  ;;  %245 = vperm.xlu0 %634, %v236_v38  }
  0x3d   : > { %330 = vmatmul.mubr.f32.gmra.mxu1 %v202_v39 }
  0x92   : > { %v241_v40 = vpop.permute.xlu0 %240  ;;  %v251_v49 = vpop.permute.xlu1 %250 }
  0xb5   : > { %v246_v44 = vpop.permute.xlu0 %245 }
  0xf9   : > { %v319_v41 = vpop.f32.mrf.mxu0  ;;  %v325_v42 = vpop.f32.mrf.mxu1 }
  0xfa   : > { %v320_v43 = vadd.f32 %v319_v41, %v241_v40  ;;  %v326_v50 = vadd.f32 %v325_v42, %v246_v44 }
  0xfb   : > { %v321_v45 = vpop.f32.mrf.mxu0  ;;  %v327_v46 = vpop.f32.mrf.mxu1 }
  0xfc   : > { %v322_v47 = vadd.f32 %v321_v45, %v241_v40  ;;  %336 = vxpose.xlu1.b32.start [1/3] (short) %v320_v43, 128  ;;  %v328_v51 = vadd.f32 %v327_v46, %v246_v44 }
  0xfd   : > { %v331_v48 = vpop.f32.mrf.mxu1 }
  0xfe   : > { %368 = vxpose.xlu0.b32.start [1/3] (short) %v322_v47, 128  ;;  %v332_v52 = vadd.f32 %v331_v48, %v251_v49 }
  0xff   : > { %v333_v53 = vpop.f32.mrf.mxu1 }
 0x100   : > { %337 = vxpose.xlu1.b32.cont [2/3] (short) %v326_v50, 128  ;;  %v334_v54 = vadd.f32 %v333_v53, %v251_v49 }
 0x102   : > { %369 = vxpose.xlu0.b32.cont [2/3] (short) %v328_v51, 128 }
 0x104   : > { %338 = vxpose.xlu1.b32.end [3/3] (short) %v332_v52, 128 }
 0x106   : > { %370 = vxpose.xlu0.b32.end [3/3] (short) %v334_v54, 128 }
 0x178   : > { %v352_v55 = vpop.trf.xlu1 }
 0x179   : > { %401 = vst.msk [vmem:[%s857_s28] sm:$0xff] %vm400_vm0, %v352_v55 }
 0x17a   : > { %v384_v56 = vpop.trf.xlu0 }
 0x17b   : > { %417 = vst.msk [vmem:[%s857_s28 + $0x80] sm:$0xff] %vm400_vm0, %v384_v56 }
 0x17c   : > { %v353_v57 = vpop.trf.xlu1 }
 0x17d   : > { %402 = vst.msk [vmem:[%s857_s28 + $0x8] sm:$0xff] %vm400_vm0, %v353_v57 }
 0x17e   : > { %v385_v58 = vpop.trf.xlu0 }
 0x17f   : > { %418 = vst.msk [vmem:[%s857_s28 + $0x88] sm:$0xff] %vm400_vm0, %v385_v58 }
 0x180   : > { %v354_v59 = vpop.trf.xlu1 }
 0x181   : > { %403 = vst.msk [vmem:[%s857_s28 + $0x10] sm:$0xff] %vm400_vm0, %v354_v59 }
 0x182   : > { %v386_v60 = vpop.trf.xlu0 }
 0x183   : > { %419 = vst.msk [vmem:[%s857_s28 + $0x90] sm:$0xff] %vm400_vm0, %v386_v60 }
 0x184   : > { %v355_v61 = vpop.trf.xlu1 }
 0x185   : > { %404 = vst.msk [vmem:[%s857_s28 + $0x18] sm:$0xff] %vm400_vm0, %v355_v61 }
 0x186   : > { %v387_v62 = vpop.trf.xlu0 }
 0x187   : > { %420 = vst.msk [vmem:[%s857_s28 + $0x98] sm:$0xff] %vm400_vm0, %v387_v62 }
 0x188   : > { %v356_v63 = vpop.trf.xlu1 }
 0x189   : > { %405 = vst.msk [vmem:[%s857_s28 + $0x20] sm:$0xff] %vm400_vm0, %v356_v63 }
 0x18a   : > { %v388_v0 = vpop.trf.xlu0 }
 0x18b   : > { %421 = vst.msk [vmem:[%s857_s28 + $0xa0] sm:$0xff] %vm400_vm0, %v388_v0 }
 0x18c   : > { %v357_v1 = vpop.trf.xlu1 }
 0x18d   : > { %406 = vst.msk [vmem:[%s857_s28 + $0x28] sm:$0xff] %vm400_vm0, %v357_v1 }
 0x18e   : > { %v389_v2 = vpop.trf.xlu0 }
 0x18f   : > { %422 = vst.msk [vmem:[%s857_s28 + $0xa8] sm:$0xff] %vm400_vm0, %v389_v2 }
 0x190   : > { %v358_v3 = vpop.trf.xlu1 }
 0x191   : > { %407 = vst.msk [vmem:[%s857_s28 + $0x30] sm:$0xff] %vm400_vm0, %v358_v3 }
 0x192   : > { %v390_v4 = vpop.trf.xlu0 }
 0x193   : > { %423 = vst.msk [vmem:[%s857_s28 + $0xb0] sm:$0xff] %vm400_vm0, %v390_v4 }
 0x194   : > { %v359_v5 = vpop.trf.xlu1 }
 0x195   : > { %408 = vst.msk [vmem:[%s857_s28 + $0x38] sm:$0xff] %vm400_vm0, %v359_v5 }
 0x196   : > { %v391_v6 = vpop.trf.xlu0 }
 0x197   : > { %424 = vst.msk [vmem:[%s857_s28 + $0xb8] sm:$0xff] %vm400_vm0, %v391_v6 }
 0x198   : > { %v360_v7 = vpop.trf.xlu1 }
 0x199   : > { %409 = vst.msk [vmem:[%s857_s28 + $0x40] sm:$0xff] %vm400_vm0, %v360_v7 }
 0x19a   : > { %v392_v8 = vpop.trf.xlu0 }
 0x19b   : > { %425 = vst.msk [vmem:[%s857_s28 + $0xc0] sm:$0xff] %vm400_vm0, %v392_v8 }
 0x19c   : > { %v361_v9 = vpop.trf.xlu1 }
 0x19d   : > { %410 = vst.msk [vmem:[%s857_s28 + $0x48] sm:$0xff] %vm400_vm0, %v361_v9 }
 0x19e   : > { %v393_v10 = vpop.trf.xlu0 }
 0x19f   : > { %426 = vst.msk [vmem:[%s857_s28 + $0xc8] sm:$0xff] %vm400_vm0, %v393_v10 }
 0x1a0   : > { %v362_v11 = vpop.trf.xlu1 }
 0x1a1   : > { %411 = vst.msk [vmem:[%s857_s28 + $0x50] sm:$0xff] %vm400_vm0, %v362_v11 }
 0x1a2   : > { %v394_v12 = vpop.trf.xlu0 }
 0x1a3   : > { %427 = vst.msk [vmem:[%s857_s28 + $0xd0] sm:$0xff] %vm400_vm0, %v394_v12 }
 0x1a4   : > { %v363_v13 = vpop.trf.xlu1 }
 0x1a5   : > { %412 = vst.msk [vmem:[%s857_s28 + $0x58] sm:$0xff] %vm400_vm0, %v363_v13 }
 0x1a6   : > { %v395_v14 = vpop.trf.xlu0 }
 0x1a7   : > { %428 = vst.msk [vmem:[%s857_s28 + $0xd8] sm:$0xff] %vm400_vm0, %v395_v14 }
 0x1a8   : > { %v364_v15 = vpop.trf.xlu1 }
 0x1a9   : > { %413 = vst.msk [vmem:[%s857_s28 + $0x60] sm:$0xff] %vm400_vm0, %v364_v15 }
 0x1aa   : > { %v396_v16 = vpop.trf.xlu0 }
 0x1ab   : > { %429 = vst.msk [vmem:[%s857_s28 + $0xe0] sm:$0xff] %vm400_vm0, %v396_v16 }
 0x1ac   : > { %v365_v17 = vpop.trf.xlu1 }
 0x1ad   : > { %414 = vst.msk [vmem:[%s857_s28 + $0x68] sm:$0xff] %vm400_vm0, %v365_v17 }
 0x1ae   : > { %v397_v18 = vpop.trf.xlu0 }
 0x1af   : > { %430 = vst.msk [vmem:[%s857_s28 + $0xe8] sm:$0xff] %vm400_vm0, %v397_v18 }
 0x1b0   : > { %v366_v19 = vpop.trf.xlu1 }
 0x1b1   : > { %415 = vst.msk [vmem:[%s857_s28 + $0x70] sm:$0xff] %vm400_vm0, %v366_v19 }
 0x1b2   : > { %v398_v20 = vpop.trf.xlu0 }
 0x1b3   : > { %431 = vst.msk [vmem:[%s857_s28 + $0xf0] sm:$0xff] %vm400_vm0, %v398_v20 }
 0x1b4   : > { %v367_v21 = vpop.trf.xlu1 }
 0x1b5   : > { %416 = vst.msk [vmem:[%s857_s28 + $0x78] sm:$0xff] %vm400_vm0, %v367_v21 }
 0x1b6   : > { %v399_v22 = vpop.trf.xlu0 }
 0x1b7   : > { %432 = vst.msk [vmem:[%s857_s28 + $0xf8] sm:$0xff] %vm400_vm0, %v399_v22 }
 0x1b8   : > { %649 = shalt.err (!%p646_p5)
}
 0x1b9   : > { %s650_s11 = scalar_lea.hbm %s924_s6, 4096  ;;  %s654_s21 = scalar_lea.hbm %s982_s3, 8192 }
 0x1ba   : > { %p651_p6 = scmp.ne.s32.totalorder %s924_s6, %s650_s11  ;;  %p655_p10 = scmp.lt.s32.totalorder %s924_s6, %s982_s3 }
 0x1bb   : > { %p656_p11 = scmp.lt.s32.totalorder %s654_s21, %s650_s11 }
 0x1bc   : > { %p652_p7 = pnand %p651_p6, %p779_p4 }
 0x1bd   : > { %p657_p12 = por %p656_p11, %p655_p10 }
 0x1be   : > { %p653_p9 = pneg %p652_p7 }
 0x1c0   : > { %p658_p13 = pnand %p657_p12, %p653_p9 }
 0x1c2   : > { %661 = shalt.err (!%p658_p13)
}
 0x1c3   : > { %s717_s27 = smov 128   ;;  %s718_s28 = smov 8  }
 0x1c4   : > { %575 = dma.vmem_to_hbm [thread:$0]  (%p779_p4), %s926_s30, 4096, %s924_s6, %s934_s15, %s717_s27, %s717_s27, %s718_s28  }
 0x1c5 PF: > { %p581_p0 = scmp.ge.s32.totalorder %s712_s17, 2  ;;  %s464_s29 = sand.u32 1, %s692_s12  }
 0x1c6   : > { %s465_s4 = scalar_lea.sflag [#allocation3], %s464_s29 }
 0x1c7   : > { %p578_p1 = pnand %p581_p0, %p786_p8 }
 0x1c9   : > { %p579_p2 = pneg %p578_p1 }
 0x1cb   : > { %687 = dma.done.wait (%p579_p2), %s465_s4, 4096  }
 0x1cc   : > { %689 = vsyncadd (%p579_p2), %s465_s4, 4294963200  ;;  %s16_s17 = sadd.s32 1, %s712_s17   ;;  %s985_s12 = smov %s696_s13 }
 0x1cd   : > { %p13_p3 = scmp.ge.s32.totalorder %s16_s17, 4   ;;  %s986_s13 = smov %s700_s14 }
 0x1ce   : > { %s987_s14 = smov %s792_s25  ;;  %s988_s15 = smov %s708_s16 }
 0x1cf   : > { %s989_s16 = smov %s991_s20  ;;  %15 = sbr.rel (!%p13_p3) target bundleno = 4 (0x4), region = 67 }
 0x1d4   :  { %470 = vsyncpa [#allocation3], 1 }
 0x1d5   :  { %472 = vsyncpa [#allocation3 + $0x1], 1 }

</bundles_post_ra>
